<compile_context>
chip_gen: v6e
topology: v6e:2x2x1
jax: 0.10.0
libtpu: 0.0.40
codegen_flags: <defaults>
</compile_context>

<pallas_src>
import functools

import jax
import jax.numpy as jnp
from jax.experimental import pallas as pl
from jax.experimental.pallas import tpu as pltpu

_REFS_PER_LAYER = 6  # wcol, gru_wih, gru_bih, gru_bhh, bn_gamma, bn_beta


# ----------------------------------------------------------------------------
# GRU weight evolution (PyTorch GRUCell, gate order r,z,n, zero hidden state)
# ----------------------------------------------------------------------------
def _gru_evolved_column(wcol, wih, bih, bhh, c):
    """Returns the evolved hidden state h as a [c, 1] column vector."""
    gi = jnp.dot(wih, wcol, preferred_element_type=jnp.float32) + bih   # [3c, 1]
    gh = bhh                                                            # h_prev == 0
    r = jax.nn.sigmoid(gi[0:c, :] + gh[0:c, :])
    z = jax.nn.sigmoid(gi[c:2 * c, :] + gh[c:2 * c, :])
    n = jnp.tanh(gi[2 * c:3 * c, :] + r * gh[2 * c:3 * c, :])
    return (1.0 - z) * n                                                # [c, 1]


# ----------------------------------------------------------------------------
# Fused forward kernel
# ----------------------------------------------------------------------------
def _evolve_gcn_kernel(*refs, num_layers, in_channels, hidden, tile_r, eps):
    n_in = 4 + _REFS_PER_LAYER * num_layers
    x_ref, adj_ref, ftw_ref, ftb_ref = refs[:4]
    layer_refs = refs[4:n_in]
    o_ref = refs[n_in]
    s_scr, t_scr, hs_scr = refs[n_in + 1:]

    p = pl.program_id(0)           # layer index
    r = pl.program_id(1)           # adjacency row-tile index
    num_r = pl.num_programs(1)

    def lrefs(l):
        base = _REFS_PER_LAYER * l
        return layer_refs[base:base + _REFS_PER_LAYER]

    # ---- one-time, parameter-only setup (off the adj critical path) --------
    @pl.when(jnp.logical_and(p == 0, r == 0))
    def _setup():
        wcol0, wih0, bih0, bhh0, _, _ = lrefs(0)
        h0 = _gru_evolved_column(wcol0[...], wih0[...], bih0[...], bhh0[...],
                                 in_channels)                            # [in_c, 1]
        # feature_transform folded into the layer-0 rank-1 matvec.
        v0 = jnp.dot(ftw_ref[...], h0, preferred_element_type=jnp.float32)   # [64, 1]
        b0 = jnp.dot(ftb_ref[...], h0, preferred_element_type=jnp.float32)   # [1, 1]
        for l in range(1, num_layers):
            wcol, wih, bih, bhh, _, _ = lrefs(l)
            hs_scr[l - 1] = _gru_evolved_column(wcol[...], wih[...], bih[...],
                                                bhh[...], hidden)
        # Layer-0 support column: s0 = x_raw @ (Wft @ h0) + (bft . h0)   [N, 1]
        s_scr[...] = (jnp.dot(x_ref[...], v0, preferred_element_type=jnp.float32)
                      + b0)

    # ---- rank-1 GCN propagate for this row tile: t[rows] = adj[rows, :] @ s
    s_b = s_scr[...].astype(jnp.bfloat16)
    t_tile = jnp.dot(adj_ref[...], s_b, preferred_element_type=jnp.float32)
    row0 = pl.multiple_of(r * tile_r, tile_r)
    t_scr[pl.ds(row0, tile_r), :] = t_tile

    # ---- per-layer epilogue after the last row tile -------------------------
    @pl.when(r == num_r - 1)
    def _finalize():
        t = t_scr[...]                                         # [N, 1]
        # Training-mode BatchNorm stats on the single column t (bias cancels).
        mean = jnp.mean(t, keepdims=True)                      # [1, 1]
        var = jnp.mean(jnp.square(t - mean), keepdims=True)    # biased variance
        t_hat = (t - mean) * jax.lax.rsqrt(var + eps)          # [N, 1]
        for l in range(num_layers):
            @pl.when(p == l)
            def _layer_epilogue():
                _, _, _, _, gamma_ref, beta_ref = lrefs(l)
                act = jnp.maximum(t_hat * gamma_ref[...] + beta_ref[...], 0.0)
                if l < num_layers - 1:
                    # Next layer's support column: s = relu(BN(.)) @ h_next
                    s_scr[...] = jnp.dot(act, hs_scr[l],
                                         preferred_element_type=jnp.float32)
                else:
                    o_ref[...] = act                           # [N, hidden]


# ----------------------------------------------------------------------------
# Wrapper
# ----------------------------------------------------------------------------
def _pick_row_tile(n):
    """Largest bf16-friendly row tile that divides n and keeps adj tiles
    (double-buffered) within a conservative VMEM budget; falls back to the full
    dimension (always a legal block)."""
    budget_rows = max(16, (6 * 1024 * 1024) // max(n, 1))
    for cand in (1024, 512, 256, 128, 64, 32, 16):
        if cand <= budget_rows and n % cand == 0:
            return cand
    return n


def _const_spec(shape):
    nd = len(shape)
    return pl.BlockSpec(shape, lambda *_: (0,) * nd)


def evolve_gcn_forward(params, x, adj, eps=1e-5):
    num_layers = len(params["layers"])
    n = x.shape[0]
    in_channels = params["ft_w"].shape[1]
    hidden = params["layers"][-1]["bn_gamma"].shape[0]

    # Reference forward coerces adj to [n, n] (zero-pad / crop) on mismatch.
    adj = jnp.asarray(adj, jnp.float32)
    if adj.ndim != 2:
        adj = jnp.zeros((n, n), jnp.float32)
    elif adj.shape != (n, n):
        fixed = jnp.zeros((n, n), jnp.float32)
        mr, mc = min(adj.shape[0], n), min(adj.shape[1], n)
        adj = fixed.at[:mr, :mc].set(adj[:mr, :mc])
    # adj is a 0/1 mask: bf16 is exact and halves the dominant HBM stream.
    adj_bf16 = adj.astype(jnp.bfloat16)

    tile_r = _pick_row_tile(n)
    num_r = n // tile_r

    args = [x.astype(jnp.float32), adj_bf16,
            params["ft_w"].astype(jnp.float32),
            params["ft_b"].reshape(1, in_channels).astype(jnp.float32)]
    in_specs = [
        _const_spec((n, 64)),                              # x resident in VMEM
        pl.BlockSpec((tile_r, n), lambda p, r: (r, 0)),    # adj row tiles (pipelined)
        _const_spec((64, in_channels)),
        _const_spec((1, in_channels)),
    ]
    for layer in params["layers"]:
        c = layer["weight"].shape[0]                       # GRU width of this layer
        layer_args = [
            layer["weight"][:, 0:1],                       # GRU input = weight[:, 0]
            layer["gru_wih"],                              # [3c, c]
            layer["gru_bih"].reshape(3 * c, 1),
            layer["gru_bhh"].reshape(3 * c, 1),
            layer["bn_gamma"].reshape(1, hidden),
            layer["bn_beta"].reshape(1, hidden),
        ]
        # gru_whh is dead (zero initial hidden state) and the GCN bias cancels
        # in training-mode BatchNorm, so neither is passed to the kernel.
        args += [a.astype(jnp.float32) for a in layer_args]
        in_specs += [_const_spec(a.shape) for a in layer_args]

    kernel = functools.partial(_evolve_gcn_kernel, num_layers=num_layers,
                               in_channels=in_channels, hidden=hidden,
                               tile_r=tile_r, eps=eps)

    grid_spec = pltpu.PrefetchScalarGridSpec(
        num_scalar_prefetch=0,
        grid=(num_layers, num_r),
        in_specs=in_specs,
        out_specs=pl.BlockSpec((n, hidden), lambda p, r: (0, 0)),
        scratch_shapes=[
            pltpu.VMEM((n, 1), jnp.float32),                             # s
            pltpu.VMEM((n, 1), jnp.float32),                             # t
            pltpu.VMEM((max(num_layers - 1, 1), hidden, 1), jnp.float32),  # h_1..h_{L-1}
        ])

    return pl.pallas_call(
        kernel,
        out_shape=jax.ShapeDtypeStruct((n, hidden), jnp.float32),
        grid_spec=grid_spec,
        compiler_params=pltpu.CompilerParams(
            # Row tiles reduce into shared VMEM scratch and each layer's s must
            # be complete before the next layer, so both axes stay sequential.
            dimension_semantics=("arbitrary", "arbitrary"),
            vmem_limit_bytes=64 * 1024 * 1024),
    )(*args)


# ----------------------------------------------------------------------------
# Parameter construction (mirrors module __init__ shapes / inits)
# ----------------------------------------------------------------------------
def _xavier_uniform(key, fan_in, fan_out):
    bound = (6.0 / (fan_in + fan_out)) ** 0.5
    return jax.random.uniform(key, (fan_in, fan_out), jnp.float32, -bound, bound)


def _uniform(key, shape, k):
    return jax.random.uniform(key, shape, jnp.float32, -k, k)


def make_gru_params(key, c):
    # PyTorch GRUCell(c, c): weight_ih/hh [3c, c], biases [3c], gate order (r,z,n).
    k = 1.0 / (c ** 0.5)
    keys = jax.random.split(key, 4)
    return {
        "gru_wih": _uniform(keys[0], (3 * c, c), k),
        "gru_whh": _uniform(keys[1], (3 * c, c), k),   # kept for fidelity; unused (h0=0)
        "gru_bih": _uniform(keys[2], (3 * c,), k),
        "gru_bhh": _uniform(keys[3], (3 * c,), k),
    }


def make_params(key, in_channels, hidden_channels, num_layers):
    keys = jax.random.split(key, 2 + num_layers * 2)
    params = {
        # feature_transform = Linear(64, in_channels); stored [64, in_c] + bias.
        "ft_w": _uniform(keys[0], (64, in_channels), 1.0 / 8.0),
        "ft_b": _uniform(keys[1], (in_channels,), 1.0 / 8.0),
        "layers": [],
    }
    dims = [(in_channels, hidden_channels)] + \
           [(hidden_channels, hidden_channels)] * (num_layers - 1)
    for i, (ci, co) in enumerate(dims):
        layer = {
            "weight": _xavier_uniform(keys[2 + 2 * i], ci, co),   # [in, out]
            "bias": jnp.zeros((co,), jnp.float32),                # zeros_ init (cancels in BN)
            "bn_gamma": jnp.ones((co,), jnp.float32),
            "bn_beta": jnp.zeros((co,), jnp.float32),
        }
        layer.update(make_gru_params(keys[3 + 2 * i], ci))        # GRUCell(ci, ci)
        params["layers"].append(layer)
    return params


# ----------------------------------------------------------------------------
if __name__ == "__main__":
    num_nodes = 32
    in_channels = 16
    hidden_channels = 32
    num_layers = 2

    key = jax.random.PRNGKey(0)
    k_param, k_x, k_adj = jax.random.split(key, 3)

    params = make_params(k_param, in_channels, hidden_channels, num_layers)

    # Raw node features are 64-dim (feature_transform is Linear(64, in_channels)).
    x = jax.random.normal(k_x, (num_nodes, 64), jnp.float32)
    adj = (jax.random.uniform(k_adj, (num_nodes, num_nodes), jnp.float32) < 0.2
           ).astype(jnp.float32)

    out = evolve_gcn_forward(params, x, adj)
    out = jax.block_until_ready(out)
    assert out.shape == (num_nodes, hidden_channels), out.shape
    print("KERNEL_OK")
</pallas_src>

<mosaic_0001>
module attributes {stable_mosaic.version = 11 : i64} {
  func.func @_evolve_gcn_kernel(%arg0: i32, %arg1: i32, %arg2: memref<32x64xf32, #tpu.memory_space<vmem>>, %arg3: memref<32x32xbf16, #tpu.memory_space<vmem>>, %arg4: memref<64x16xf32, #tpu.memory_space<vmem>>, %arg5: memref<1x16xf32, #tpu.memory_space<vmem>>, %arg6: memref<16x1xf32, #tpu.memory_space<vmem>>, %arg7: memref<48x16xf32, #tpu.memory_space<vmem>>, %arg8: memref<48x1xf32, #tpu.memory_space<vmem>>, %arg9: memref<48x1xf32, #tpu.memory_space<vmem>>, %arg10: memref<1x32xf32, #tpu.memory_space<vmem>>, %arg11: memref<1x32xf32, #tpu.memory_space<vmem>>, %arg12: memref<32x1xf32, #tpu.memory_space<vmem>>, %arg13: memref<96x32xf32, #tpu.memory_space<vmem>>, %arg14: memref<96x1xf32, #tpu.memory_space<vmem>>, %arg15: memref<96x1xf32, #tpu.memory_space<vmem>>, %arg16: memref<1x32xf32, #tpu.memory_space<vmem>>, %arg17: memref<1x32xf32, #tpu.memory_space<vmem>>, %arg18: memref<32x32xf32, #tpu.memory_space<vmem>>, %arg19: memref<32x1xf32, #tpu.memory_space<vmem>>, %arg20: memref<32x1xf32, #tpu.memory_space<vmem>>, %arg21: memref<1x32x1xf32, #tpu.memory_space<vmem>>) attributes {dimension_semantics = [#tpu.dimension_semantics<arbitrary>, #tpu.dimension_semantics<arbitrary>], iteration_bounds = array<i64: 2, 1>, scalar_prefetch = 0 : i64, scratch_operands = 3 : i64, tpu.core_type = #tpu.core_type<tc>, window_params = [{pipeline_mode = #tpu.pipeline_mode<synchronous>, transform_indices = @transform_0, window_bounds = array<i64: 32, 64>}, {transform_indices = @transform_1, window_bounds = array<i64: 32, 32>}, {pipeline_mode = #tpu.pipeline_mode<synchronous>, transform_indices = @transform_2, window_bounds = array<i64: 64, 16>}, {pipeline_mode = #tpu.pipeline_mode<synchronous>, transform_indices = @transform_3, window_bounds = array<i64: 1, 16>}, {pipeline_mode = #tpu.pipeline_mode<synchronous>, transform_indices = @transform_4, window_bounds = array<i64: 16, 1>}, {pipeline_mode = #tpu.pipeline_mode<synchronous>, transform_indices = @transform_5, window_bounds = array<i64: 48, 16>}, {pipeline_mode = #tpu.pipeline_mode<synchronous>, transform_indices = @transform_6, window_bounds = array<i64: 48, 1>}, {pipeline_mode = #tpu.pipeline_mode<synchronous>, transform_indices = @transform_7, window_bounds = array<i64: 48, 1>}, {pipeline_mode = #tpu.pipeline_mode<synchronous>, transform_indices = @transform_8, window_bounds = array<i64: 1, 32>}, {pipeline_mode = #tpu.pipeline_mode<synchronous>, transform_indices = @transform_9, window_bounds = array<i64: 1, 32>}, {pipeline_mode = #tpu.pipeline_mode<synchronous>, transform_indices = @transform_10, window_bounds = array<i64: 32, 1>}, {pipeline_mode = #tpu.pipeline_mode<synchronous>, transform_indices = @transform_11, window_bounds = array<i64: 96, 32>}, {pipeline_mode = #tpu.pipeline_mode<synchronous>, transform_indices = @transform_12, window_bounds = array<i64: 96, 1>}, {pipeline_mode = #tpu.pipeline_mode<synchronous>, transform_indices = @transform_13, window_bounds = array<i64: 96, 1>}, {pipeline_mode = #tpu.pipeline_mode<synchronous>, transform_indices = @transform_14, window_bounds = array<i64: 1, 32>}, {pipeline_mode = #tpu.pipeline_mode<synchronous>, transform_indices = @transform_15, window_bounds = array<i64: 1, 32>}, {pipeline_mode = #tpu.pipeline_mode<synchronous>, transform_indices = @transform_16, window_bounds = array<i64: 32, 32>}]} {
    %c0_i32 = arith.constant 0 : i32
    %0 = arith.cmpi eq, %arg0, %c0_i32 : i32
    %c0_i32_0 = arith.constant 0 : i32
    %1 = arith.cmpi eq, %arg1, %c0_i32_0 : i32
    %2 = arith.andi %0, %1 : i1
    %3 = arith.extui %2 : i1 to i32
    %c0_i32_1 = arith.constant 0 : i32
    %4 = arith.cmpi ne, %3, %c0_i32_1 : i32
    scf.if %4 {
      %c0_8 = arith.constant 0 : index
      %c0_9 = arith.constant 0 : index
      %16 = vector.load %arg6[%c0_8, %c0_9] : memref<16x1xf32, #tpu.memory_space<vmem>>, vector<16x1xf32>
      %c0_10 = arith.constant 0 : index
      %c0_11 = arith.constant 0 : index
      %17 = vector.load %arg7[%c0_10, %c0_11] : memref<48x16xf32, #tpu.memory_space<vmem>>, vector<48x16xf32>
      %c0_12 = arith.constant 0 : index
      %c0_13 = arith.constant 0 : index
      %18 = vector.load %arg8[%c0_12, %c0_13] : memref<48x1xf32, #tpu.memory_space<vmem>>, vector<48x1xf32>
      %c0_14 = arith.constant 0 : index
      %c0_15 = arith.constant 0 : index
      %19 = vector.load %arg9[%c0_14, %c0_15] : memref<48x1xf32, #tpu.memory_space<vmem>>, vector<48x1xf32>
      %cst_16 = arith.constant dense<0.000000e+00> : vector<48x1xf32>
      %20 = tpu.matmul %17, %16, %cst_16 {dimension_numbers = #tpu.dot_dimension_numbers<[1], [0], [0], [1], [0, 0, 1, 1], [], []>} : vector<48x16xf32>, vector<16x1xf32>, vector<48x1xf32> -> vector<48x1xf32>
      %21 = arith.addf %20, %18 : vector<48x1xf32>
      %22 = vector.extract_strided_slice %21 {offsets = [0, 0], sizes = [16, 1], strides = [1, 1]} : vector<48x1xf32> to vector<16x1xf32>
      %23 = vector.extract_strided_slice %19 {offsets = [0, 0], sizes = [16, 1], strides = [1, 1]} : vector<48x1xf32> to vector<16x1xf32>
      %24 = arith.addf %22, %23 : vector<16x1xf32>
      %25 = arith.negf %24 : vector<16x1xf32>
      %26 = math.exp %25 : vector<16x1xf32>
      %cst_17 = arith.constant 1.000000e+00 : f32
      %27 = vector.broadcast %cst_17 : f32 to vector<16x1xf32>
      %28 = arith.addf %27, %26 : vector<16x1xf32>
      %29 = arith.divf %27, %28 : vector<16x1xf32>
      %30 = vector.extract_strided_slice %21 {offsets = [16, 0], sizes = [16, 1], strides = [1, 1]} : vector<48x1xf32> to vector<16x1xf32>
      %31 = vector.extract_strided_slice %19 {offsets = [16, 0], sizes = [16, 1], strides = [1, 1]} : vector<48x1xf32> to vector<16x1xf32>
      %32 = arith.addf %30, %31 : vector<16x1xf32>
      %33 = arith.negf %32 : vector<16x1xf32>
      %34 = math.exp %33 : vector<16x1xf32>
      %cst_18 = arith.constant 1.000000e+00 : f32
      %35 = vector.broadcast %cst_18 : f32 to vector<16x1xf32>
      %36 = arith.addf %35, %34 : vector<16x1xf32>
      %37 = arith.divf %35, %36 : vector<16x1xf32>
      %38 = vector.extract_strided_slice %21 {offsets = [32, 0], sizes = [16, 1], strides = [1, 1]} : vector<48x1xf32> to vector<16x1xf32>
      %39 = vector.extract_strided_slice %19 {offsets = [32, 0], sizes = [16, 1], strides = [1, 1]} : vector<48x1xf32> to vector<16x1xf32>
      %40 = arith.mulf %29, %39 : vector<16x1xf32>
      %41 = arith.addf %38, %40 : vector<16x1xf32>
      %42 = math.tanh %41 : vector<16x1xf32>
      %cst_19 = arith.constant 1.000000e+00 : f32
      %43 = vector.broadcast %cst_19 : f32 to vector<16x1xf32>
      %44 = arith.subf %43, %37 : vector<16x1xf32>
      %45 = arith.mulf %44, %42 : vector<16x1xf32>
      %c0_20 = arith.constant 0 : index
      %c0_21 = arith.constant 0 : index
      %46 = vector.load %arg4[%c0_20, %c0_21] : memref<64x16xf32, #tpu.memory_space<vmem>>, vector<64x16xf32>
      %cst_22 = arith.constant dense<0.000000e+00> : vector<64x1xf32>
      %47 = tpu.matmul %46, %45, %cst_22 {dimension_numbers = #tpu.dot_dimension_numbers<[1], [0], [0], [1], [0, 0, 1, 1], [], []>} : vector<64x16xf32>, vector<16x1xf32>, vector<64x1xf32> -> vector<64x1xf32>
      %c0_23 = arith.constant 0 : index
      %c0_24 = arith.constant 0 : index
      %48 = vector.load %arg5[%c0_23, %c0_24] : memref<1x16xf32, #tpu.memory_space<vmem>>, vector<1x16xf32>
      %cst_25 = arith.constant dense<0.000000e+00> : vector<1x1xf32>
      %49 = tpu.matmul %48, %45, %cst_25 {dimension_numbers = #tpu.dot_dimension_numbers<[1], [0], [0], [1], [0, 0, 1, 1], [], []>} : vector<1x16xf32>, vector<16x1xf32>, vector<1x1xf32> -> vector<1x1xf32>
      %c0_26 = arith.constant 0 : index
      %c0_27 = arith.constant 0 : index
      %50 = vector.load %arg12[%c0_26, %c0_27] : memref<32x1xf32, #tpu.memory_space<vmem>>, vector<32x1xf32>
      %c0_28 = arith.constant 0 : index
      %c0_29 = arith.constant 0 : index
      %51 = vector.load %arg13[%c0_28, %c0_29] : memref<96x32xf32, #tpu.memory_space<vmem>>, vector<96x32xf32>
      %c0_30 = arith.constant 0 : index
      %c0_31 = arith.constant 0 : index
      %52 = vector.load %arg14[%c0_30, %c0_31] : memref<96x1xf32, #tpu.memory_space<vmem>>, vector<96x1xf32>
      %c0_32 = arith.constant 0 : index
      %c0_33 = arith.constant 0 : index
      %53 = vector.load %arg15[%c0_32, %c0_33] : memref<96x1xf32, #tpu.memory_space<vmem>>, vector<96x1xf32>
      %cst_34 = arith.constant dense<0.000000e+00> : vector<96x1xf32>
      %54 = tpu.matmul %51, %50, %cst_34 {dimension_numbers = #tpu.dot_dimension_numbers<[1], [0], [0], [1], [0, 0, 1, 1], [], []>} : vector<96x32xf32>, vector<32x1xf32>, vector<96x1xf32> -> vector<96x1xf32>
      %55 = arith.addf %54, %52 : vector<96x1xf32>
      %56 = vector.extract_strided_slice %55 {offsets = [0, 0], sizes = [32, 1], strides = [1, 1]} : vector<96x1xf32> to vector<32x1xf32>
      %57 = vector.extract_strided_slice %53 {offsets = [0, 0], sizes = [32, 1], strides = [1, 1]} : vector<96x1xf32> to vector<32x1xf32>
      %58 = arith.addf %56, %57 : vector<32x1xf32>
      %59 = arith.negf %58 : vector<32x1xf32>
      %60 = math.exp %59 : vector<32x1xf32>
      %cst_35 = arith.constant 1.000000e+00 : f32
      %61 = vector.broadcast %cst_35 : f32 to vector<32x1xf32>
      %62 = arith.addf %61, %60 : vector<32x1xf32>
      %63 = arith.divf %61, %62 : vector<32x1xf32>
      %64 = vector.extract_strided_slice %55 {offsets = [32, 0], sizes = [32, 1], strides = [1, 1]} : vector<96x1xf32> to vector<32x1xf32>
      %65 = vector.extract_strided_slice %53 {offsets = [32, 0], sizes = [32, 1], strides = [1, 1]} : vector<96x1xf32> to vector<32x1xf32>
      %66 = arith.addf %64, %65 : vector<32x1xf32>
      %67 = arith.negf %66 : vector<32x1xf32>
      %68 = math.exp %67 : vector<32x1xf32>
      %cst_36 = arith.constant 1.000000e+00 : f32
      %69 = vector.broadcast %cst_36 : f32 to vector<32x1xf32>
      %70 = arith.addf %69, %68 : vector<32x1xf32>
      %71 = arith.divf %69, %70 : vector<32x1xf32>
      %72 = vector.extract_strided_slice %55 {offsets = [64, 0], sizes = [32, 1], strides = [1, 1]} : vector<96x1xf32> to vector<32x1xf32>
      %73 = vector.extract_strided_slice %53 {offsets = [64, 0], sizes = [32, 1], strides = [1, 1]} : vector<96x1xf32> to vector<32x1xf32>
      %74 = arith.mulf %63, %73 : vector<32x1xf32>
      %75 = arith.addf %72, %74 : vector<32x1xf32>
      %76 = math.tanh %75 : vector<32x1xf32>
      %cst_37 = arith.constant 1.000000e+00 : f32
      %77 = vector.broadcast %cst_37 : f32 to vector<32x1xf32>
      %78 = arith.subf %77, %71 : vector<32x1xf32>
      %79 = arith.mulf %78, %76 : vector<32x1xf32>
      %c0_38 = arith.constant 0 : index
      %c0_39 = arith.constant 0 : index
      %c0_40 = arith.constant 0 : index
      %80 = vector.load %arg21[%c0_38, %c0_39, %c0_40] : memref<1x32x1xf32, #tpu.memory_space<vmem>>, vector<1x32x1xf32>
      %81 = vector.shape_cast %80 : vector<1x32x1xf32> to vector<32x1xf32>
      %82 = vector.shape_cast %79 : vector<32x1xf32> to vector<1x32x1xf32>
      tpu.vector_store %arg21[%c0_38, %c0_39, %c0_40], %82 {strides = array<i32>} : memref<1x32x1xf32, #tpu.memory_space<vmem>>, vector<1x32x1xf32>,
      %c0_41 = arith.constant 0 : index
      %c0_42 = arith.constant 0 : index
      %83 = vector.load %arg2[%c0_41, %c0_42] : memref<32x64xf32, #tpu.memory_space<vmem>>, vector<32x64xf32>
      %cst_43 = arith.constant dense<0.000000e+00> : vector<32x1xf32>
      %84 = tpu.matmul %83, %47, %cst_43 {dimension_numbers = #tpu.dot_dimension_numbers<[1], [0], [0], [1], [0, 0, 1, 1], [], []>} : vector<32x64xf32>, vector<64x1xf32>, vector<32x1xf32> -> vector<32x1xf32>
      %85 = vector.broadcast %49 : vector<1x1xf32> to vector<32x1xf32>
      %86 = arith.addf %84, %85 : vector<32x1xf32>
      %c0_44 = arith.constant 0 : index
      %c0_45 = arith.constant 0 : index
      %87 = vector.load %arg19[%c0_44, %c0_45] : memref<32x1xf32, #tpu.memory_space<vmem>>, vector<32x1xf32>
      tpu.vector_store %arg19[%c0_44, %c0_45], %86 {strides = array<i32>} : memref<32x1xf32, #tpu.memory_space<vmem>>, vector<32x1xf32>,
    } else {
    }
    %c0 = arith.constant 0 : index
    %c0_2 = arith.constant 0 : index
    %5 = vector.load %arg19[%c0, %c0_2] : memref<32x1xf32, #tpu.memory_space<vmem>>, vector<32x1xf32>
    %6 = arith.truncf %5 : vector<32x1xf32> to vector<32x1xbf16>
    %c0_3 = arith.constant 0 : index
    %c0_4 = arith.constant 0 : index
    %7 = vector.load %arg3[%c0_3, %c0_4] : memref<32x32xbf16, #tpu.memory_space<vmem>>, vector<32x32xbf16>
    %cst = arith.constant dense<0.000000e+00> : vector<32x1xf32>
    %8 = tpu.matmul %7, %6, %cst {dimension_numbers = #tpu.dot_dimension_numbers<[1], [0], [0], [1], [0, 0, 1, 1], [], []>} : vector<32x32xbf16>, vector<32x1xbf16>, vector<32x1xf32> -> vector<32x1xf32>
    %c32_i32 = arith.constant 32 : i32
    %9 = arith.muli %arg1, %c32_i32 : i32
    %10 = tpu.assume_multiple %9, 32 : i32
    %11 = arith.index_cast %10 : i32 to index
    %c0_5 = arith.constant 0 : index
    %12 = vector.load %arg20[%11, %c0_5] : memref<32x1xf32, #tpu.memory_space<vmem>>, vector<32x1xf32>
    tpu.vector_store %arg20[%11, %c0_5], %8 {strides = array<i32>} : memref<32x1xf32, #tpu.memory_space<vmem>>, vector<32x1xf32>,
    %c0_i32_6 = arith.constant 0 : i32
    %13 = arith.cmpi eq, %arg1, %c0_i32_6 : i32
    %14 = arith.extui %13 : i1 to i32
    %c0_i32_7 = arith.constant 0 : i32
    %15 = arith.cmpi ne, %14, %c0_i32_7 : i32
    scf.if %15 {
      %c0_8 = arith.constant 0 : index
      %c0_9 = arith.constant 0 : index
      %16 = vector.load %arg20[%c0_8, %c0_9] : memref<32x1xf32, #tpu.memory_space<vmem>>, vector<32x1xf32>
      %17 = vector.shape_cast %16 : vector<32x1xf32> to vector<1x32x1xf32>
      %cst_10 = arith.constant dense<0.000000e+00> : vector<1xf32>
      %18 = vector.multi_reduction <add>, %17, %cst_10 [1, 2] : vector<1x32x1xf32> to vector<1xf32>
      %19 = vector.shape_cast %18 : vector<1xf32> to vector<1x1x1xf32>
      %20 = vector.extract %19[0, 0, 0] : f32 from vector<1x1x1xf32>
      %21 = vector.broadcast %20 : f32 to vector<1x1xf32>
      %cst_11 = arith.constant 3.200000e+01 : f32
      %22 = vector.broadcast %cst_11 : f32 to vector<1x1xf32>
      %23 = arith.divf %21, %22 : vector<1x1xf32>
      %24 = vector.broadcast %23 : vector<1x1xf32> to vector<32x1xf32>
      %25 = arith.subf %16, %24 : vector<32x1xf32>
      %26 = arith.mulf %25, %25 : vector<32x1xf32>
      %27 = vector.shape_cast %26 : vector<32x1xf32> to vector<1x32x1xf32>
      %cst_12 = arith.constant dense<0.000000e+00> : vector<1xf32>
      %28 = vector.multi_reduction <add>, %27, %cst_12 [1, 2] : vector<1x32x1xf32> to vector<1xf32>
      %29 = vector.shape_cast %28 : vector<1xf32> to vector<1x1x1xf32>
      %30 = vector.extract %29[0, 0, 0] : f32 from vector<1x1x1xf32>
      %31 = vector.broadcast %30 : f32 to vector<1x1xf32>
      %cst_13 = arith.constant 3.200000e+01 : f32
      %32 = vector.broadcast %cst_13 : f32 to vector<1x1xf32>
      %33 = arith.divf %31, %32 : vector<1x1xf32>
      %34 = vector.broadcast %23 : vector<1x1xf32> to vector<32x1xf32>
      %35 = arith.subf %16, %34 : vector<32x1xf32>
      %cst_14 = arith.constant 9.99999974E-6 : f32
      %36 = vector.broadcast %cst_14 : f32 to vector<1x1xf32>
      %37 = arith.addf %33, %36 : vector<1x1xf32>
      %38 = math.rsqrt %37 : vector<1x1xf32>
      %39 = vector.broadcast %38 : vector<1x1xf32> to vector<32x1xf32>
      %40 = arith.mulf %35, %39 : vector<32x1xf32>
      %c0_i32_15 = arith.constant 0 : i32
      %41 = arith.cmpi eq, %arg0, %c0_i32_15 : i32
      %42 = arith.extui %41 : i1 to i32
      %c0_i32_16 = arith.constant 0 : i32
      %43 = arith.cmpi ne, %42, %c0_i32_16 : i32
      scf.if %43 {
        %c0_18 = arith.constant 0 : index
        %c0_19 = arith.constant 0 : index
        %47 = vector.load %arg10[%c0_18, %c0_19] : memref<1x32xf32, #tpu.memory_space<vmem>>, vector<1x32xf32>
        %48 = vector.broadcast %40 : vector<32x1xf32> to vector<32x32xf32>
        %49 = vector.broadcast %47 : vector<1x32xf32> to vector<32x32xf32>
        %50 = arith.mulf %48, %49 : vector<32x32xf32>
        %c0_20 = arith.constant 0 : index
        %c0_21 = arith.constant 0 : index
        %51 = vector.load %arg11[%c0_20, %c0_21] : memref<1x32xf32, #tpu.memory_space<vmem>>, vector<1x32xf32>
        %52 = vector.broadcast %51 : vector<1x32xf32> to vector<32x32xf32>
        %53 = arith.addf %50, %52 : vector<32x32xf32>
        %cst_22 = arith.constant 0.000000e+00 : f32
        %54 = vector.broadcast %cst_22 : f32 to vector<32x32xf32>
        %55 = arith.maximumf %53, %54 : vector<32x32xf32>
        %c0_23 = arith.constant 0 : index
        %c0_24 = arith.constant 0 : index
        %c0_25 = arith.constant 0 : index
        %56 = vector.load %arg21[%c0_23, %c0_24, %c0_25] : memref<1x32x1xf32, #tpu.memory_space<vmem>>, vector<1x32x1xf32>
        %57 = vector.shape_cast %56 : vector<1x32x1xf32> to vector<32x1xf32>
        %cst_26 = arith.constant dense<0.000000e+00> : vector<32x1xf32>
        %58 = tpu.matmul %55, %57, %cst_26 {dimension_numbers = #tpu.dot_dimension_numbers<[1], [0], [0], [1], [0, 0, 1, 1], [], []>} : vector<32x32xf32>, vector<32x1xf32>, vector<32x1xf32> -> vector<32x1xf32>
        %c0_27 = arith.constant 0 : index
        %c0_28 = arith.constant 0 : index
        %59 = vector.load %arg19[%c0_27, %c0_28] : memref<32x1xf32, #tpu.memory_space<vmem>>, vector<32x1xf32>
        tpu.vector_store %arg19[%c0_27, %c0_28], %58 {strides = array<i32>} : memref<32x1xf32, #tpu.memory_space<vmem>>, vector<32x1xf32>,
      } else {
      }
      %c1_i32 = arith.constant 1 : i32
      %44 = arith.cmpi eq, %arg0, %c1_i32 : i32
      %45 = arith.extui %44 : i1 to i32
      %c0_i32_17 = arith.constant 0 : i32
      %46 = arith.cmpi ne, %45, %c0_i32_17 : i32
      scf.if %46 {
        %c0_18 = arith.constant 0 : index
        %c0_19 = arith.constant 0 : index
        %47 = vector.load %arg16[%c0_18, %c0_19] : memref<1x32xf32, #tpu.memory_space<vmem>>, vector<1x32xf32>
        %48 = vector.broadcast %40 : vector<32x1xf32> to vector<32x32xf32>
        %49 = vector.broadcast %47 : vector<1x32xf32> to vector<32x32xf32>
        %50 = arith.mulf %48, %49 : vector<32x32xf32>
        %c0_20 = arith.constant 0 : index
        %c0_21 = arith.constant 0 : index
        %51 = vector.load %arg17[%c0_20, %c0_21] : memref<1x32xf32, #tpu.memory_space<vmem>>, vector<1x32xf32>
        %52 = vector.broadcast %51 : vector<1x32xf32> to vector<32x32xf32>
        %53 = arith.addf %50, %52 : vector<32x32xf32>
        %cst_22 = arith.constant 0.000000e+00 : f32
        %54 = vector.broadcast %cst_22 : f32 to vector<32x32xf32>
        %55 = arith.maximumf %53, %54 : vector<32x32xf32>
        %c0_23 = arith.constant 0 : index
        %c0_24 = arith.constant 0 : index
        %56 = vector.load %arg18[%c0_23, %c0_24] : memref<32x32xf32, #tpu.memory_space<vmem>>, vector<32x32xf32>
        tpu.vector_store %arg18[%c0_23, %c0_24], %55 {strides = array<i32>} : memref<32x32xf32, #tpu.memory_space<vmem>>, vector<32x32xf32>,
      } else {
      }
    } else {
    }
    return
  }
  func.func @transform_0(%arg0: i32, %arg1: i32) -> (i32, i32) {
    %c0_i32 = arith.constant 0 : i32
    %c0_i32_0 = arith.constant 0 : i32
    %c0_i32_1 = arith.constant 0 : i32
    return %c0_i32, %c0_i32_0 : i32, i32
  }
  func.func @transform_1(%arg0: i32, %arg1: i32) -> (i32, i32) {
    %c0_i32 = arith.constant 0 : i32
    %c0_i32_0 = arith.constant 0 : i32
    return %arg1, %c0_i32 : i32, i32
  }
  func.func @transform_2(%arg0: i32, %arg1: i32) -> (i32, i32) {
    %c0_i32 = arith.constant 0 : i32
    %c0_i32_0 = arith.constant 0 : i32
    %c0_i32_1 = arith.constant 0 : i32
    return %c0_i32, %c0_i32_0 : i32, i32
  }
  func.func @transform_3(%arg0: i32, %arg1: i32) -> (i32, i32) {
    %c0_i32 = arith.constant 0 : i32
    %c0_i32_0 = arith.constant 0 : i32
    %c0_i32_1 = arith.constant 0 : i32
    return %c0_i32, %c0_i32_0 : i32, i32
  }
  func.func @transform_4(%arg0: i32, %arg1: i32) -> (i32, i32) {
    %c0_i32 = arith.constant 0 : i32
    %c0_i32_0 = arith.constant 0 : i32
    %c0_i32_1 = arith.constant 0 : i32
    return %c0_i32, %c0_i32_0 : i32, i32
  }
  func.func @transform_5(%arg0: i32, %arg1: i32) -> (i32, i32) {
    %c0_i32 = arith.constant 0 : i32
    %c0_i32_0 = arith.constant 0 : i32
    %c0_i32_1 = arith.constant 0 : i32
    return %c0_i32, %c0_i32_0 : i32, i32
  }
  func.func @transform_6(%arg0: i32, %arg1: i32) -> (i32, i32) {
    %c0_i32 = arith.constant 0 : i32
    %c0_i32_0 = arith.constant 0 : i32
    %c0_i32_1 = arith.constant 0 : i32
    return %c0_i32, %c0_i32_0 : i32, i32
  }
  func.func @transform_7(%arg0: i32, %arg1: i32) -> (i32, i32) {
    %c0_i32 = arith.constant 0 : i32
    %c0_i32_0 = arith.constant 0 : i32
    %c0_i32_1 = arith.constant 0 : i32
    return %c0_i32, %c0_i32_0 : i32, i32
  }
  func.func @transform_8(%arg0: i32, %arg1: i32) -> (i32, i32) {
    %c0_i32 = arith.constant 0 : i32
    %c0_i32_0 = arith.constant 0 : i32
    %c0_i32_1 = arith.constant 0 : i32
    return %c0_i32, %c0_i32_0 : i32, i32
  }
  func.func @transform_9(%arg0: i32, %arg1: i32) -> (i32, i32) {
    %c0_i32 = arith.constant 0 : i32
    %c0_i32_0 = arith.constant 0 : i32
    %c0_i32_1 = arith.constant 0 : i32
    return %c0_i32, %c0_i32_0 : i32, i32
  }
  func.func @transform_10(%arg0: i32, %arg1: i32) -> (i32, i32) {
    %c0_i32 = arith.constant 0 : i32
    %c0_i32_0 = arith.constant 0 : i32
    %c0_i32_1 = arith.constant 0 : i32
    return %c0_i32, %c0_i32_0 : i32, i32
  }
  func.func @transform_11(%arg0: i32, %arg1: i32) -> (i32, i32) {
    %c0_i32 = arith.constant 0 : i32
    %c0_i32_0 = arith.constant 0 : i32
    %c0_i32_1 = arith.constant 0 : i32
    return %c0_i32, %c0_i32_0 : i32, i32
  }
  func.func @transform_12(%arg0: i32, %arg1: i32) -> (i32, i32) {
    %c0_i32 = arith.constant 0 : i32
    %c0_i32_0 = arith.constant 0 : i32
    %c0_i32_1 = arith.constant 0 : i32
    return %c0_i32, %c0_i32_0 : i32, i32
  }
  func.func @transform_13(%arg0: i32, %arg1: i32) -> (i32, i32) {
    %c0_i32 = arith.constant 0 : i32
    %c0_i32_0 = arith.constant 0 : i32
    %c0_i32_1 = arith.constant 0 : i32
    return %c0_i32, %c0_i32_0 : i32, i32
  }
  func.func @transform_14(%arg0: i32, %arg1: i32) -> (i32, i32) {
    %c0_i32 = arith.constant 0 : i32
    %c0_i32_0 = arith.constant 0 : i32
    %c0_i32_1 = arith.constant 0 : i32
    return %c0_i32, %c0_i32_0 : i32, i32
  }
  func.func @transform_15(%arg0: i32, %arg1: i32) -> (i32, i32) {
    %c0_i32 = arith.constant 0 : i32
    %c0_i32_0 = arith.constant 0 : i32
    %c0_i32_1 = arith.constant 0 : i32
    return %c0_i32, %c0_i32_0 : i32, i32
  }
  func.func @transform_16(%arg0: i32, %arg1: i32) -> (i32, i32) {
    %c0_i32 = arith.constant 0 : i32
    %c0_i32_0 = arith.constant 0 : i32
    %c0_i32_1 = arith.constant 0 : i32
    return %c0_i32, %c0_i32_0 : i32, i32
  }
}

</mosaic_0001>

<bundles_post_ra>
// kernel: tpu_custom_call.1
= control target key start
LH: loop header
LB: loop body
LE: loop exit
PB: predicated region body
PF: predicated region fallthrough
CT: control target
= control target key end

     0   :  { %s2582_s0 = inlined_call_operand.vmem [shape: f32[32,64], index: 0, kind: input, shape index: {}]   ;;  %s2583_s1 = inlined_call_operand.vmem [shape: bf16[32,32], index: 1, kind: input, shape index: {}]   ;;  %s2584_s2 = inlined_call_operand.vmem [shape: f32[64,16], index: 2, kind: input, shape index: {}]   ;;  %s2585_s3 = inlined_call_operand.vmem [shape: f32[1,16], index: 3, kind: input, shape index: {}]   ;;  %s2586_s4 = inlined_call_operand.vmem [shape: f32[16,1], index: 4, kind: input, shape index: {}]   ;;  %s2587_s5 = inlined_call_operand.vmem [shape: f32[48,16], index: 5, kind: input, shape index: {}]   ;;  %s2588_s6 = inlined_call_operand.vmem [shape: f32[48,1], index: 6, kind: input, shape index: {}]   ;;  %s2589_s7 = inlined_call_operand.vmem [shape: f32[48,1], index: 7, kind: input, shape index: {}]   ;;  %s2590_s8 = inlined_call_operand.vmem [shape: f32[1,32], index: 8, kind: input, shape index: {}]   ;;  %s2591_s9 = inlined_call_operand.vmem [shape: f32[1,32], index: 9, kind: input, shape index: {}]   ;;  %s2592_s10 = inlined_call_operand.vmem [shape: f32[32,1], index: 10, kind: input, shape index: {}]   ;;  %s2593_s11 = inlined_call_operand.vmem [shape: f32[96,32], index: 11, kind: input, shape index: {}]   ;;  %s2594_s12 = inlined_call_operand.vmem [shape: f32[96,1], index: 12, kind: input, shape index: {}]   ;;  %s2595_s13 = inlined_call_operand.vmem [shape: f32[96,1], index: 13, kind: input, shape index: {}]   ;;  %s2596_s14 = inlined_call_operand.vmem [shape: f32[1,32], index: 14, kind: input, shape index: {}]   ;;  %s2597_s15 = inlined_call_operand.vmem [shape: f32[1,32], index: 15, kind: input, shape index: {}]   ;;  %s2598_s16 = inlined_call_operand.hbm [shape: f32[32,32], index: 16, kind: output, shape index: {}]  }
   0x1   :  { %2600 = sst [smem:[#allocation8_spill]] %s2582_s0 }
   0x2   :  { %21 = vsyncpa [#allocation6], 0  ;;  %s2211_s21 = smov 0   ;;  %s2213_s22 = smov 0  }
   0x3   :  { %s2215_s23 = smov 0  }
   0x4 LB: > { %s39_s25 = sadd.s32 1, %s2113_s22  ;;  %p1719_p1 = scmp.ge.s32.totalorder %s2117_s23, 1  ;;  %s2117_s23 = sphi %s2215_s23, %s27_s23   ;;  %s2113_s22 = sphi %s2213_s22, %s2605_s22   ;;  %s2109_s21 = sphi %s2211_s21, %s2604_s21  }
   0x5   : > { %p41_p0 = scmp.ge.s32.totalorder %s39_s25, 2  ;;  %p471_p2 = scmp.lt.s32.totalorder %s2117_s23, 3 }
   0x7   : > { %s2607_s25 = smov (%p41_p0, %s39_s25), 0  ;;  %p472_p3 = pnand %p1719_p1, %p471_p2 }
   0x8   : > { %p523_p4 = scmp.eq.s32.totalorder (!%p472_p3), %s2109_s21, 0 }
   0x9   : > { %475 = sbr.rel (%p472_p3) target bundleno = 1853 (0x73d), region = 84 }
   0xe   : > { %528 = sbr.rel (!%p523_p4) target bundleno = 695 (0x2b7), region = 88  ;;  %v530_v0 = vld [vmem:[%s2586_s4 + $0x8] sm:$0xff] (%p523_p4)  ;;  %v529_v1 = vld [vmem:[%s2586_s4] sm:$0xff] (%p523_p4)  ;;  %vm549_vm0 = vcmask (%p523_p4), 130048   ;;  %v533_v4 = vld [vmem:[%s2587_s5 + $0x10] sm:$0xff] (%p523_p4)  ;;  %v2119_v8 = vmov (%p523_p4), 0.0  }
   0xf   : > { %v531_v2 = vld [vmem:[%s2587_s5] sm:$0xff] (%p523_p4)  ;;  %1844 = vmatprep.subr.mxu0 (%p523_p4), %v530_v0  ;;  %v532_v3 = vld [vmem:[%s2587_s5 + $0x8] sm:$0xff] (%p523_p4)  ;;  %v534_v5 = vld [vmem:[%s2587_s5 + $0x18] sm:$0xff] (%p523_p4)  ;;  %vm952_vm1 = vcmask (%p523_p4), 261120   ;;  %vm2120_vm2 = vmmov (%p523_p4), 0   ;;  %s2601_s28 = sld [smem:[#allocation8_spill]] (%p523_p4) }
  0x10   : > { %1848 = vmatprep.mubr.msk.f32.mxu0 (%p523_p4), %vm549_vm0, %v531_v2  ;;  %1845 = vmatpush3.msra.mxu0 (%p523_p4), %v530_v0  ;;  %v535_v6 = vld [vmem:[%s2587_s5 + $0x20] sm:$0xff] (%p523_p4)  ;;  %v536_v7 = vld [vmem:[%s2587_s5 + $0x28] sm:$0xff] (%p523_p4)  ;;  %v540_v17 = vld [vmem:[%s2588_s6 + $0x18] sm:$0xff] (%p523_p4)  ;;  %vm1203_vm3 = vcmask (%p523_p4), 523264   ;;  %vm1190_vm4 = vcmask (%p523_p4), 7168  }
  0x11   : > { %1846 = vmatprep.subr.mxu0 (%p523_p4), %v529_v1  ;;  %v701_v9 = vld [vmem:[%s2584_s2] sm:$0xff] (%p523_p4)  ;;  %v538_v10 = vld [vmem:[%s2588_s6 + $0x8] sm:$0xff] (%p523_p4)  ;;  %v546_v20 = vld [vmem:[%s2589_s7 + $0x18] sm:$0xff] (%p523_p4) }
  0x12   : > { %1847 = vmatpush3.msra.mxu0 (%p523_p4), %v529_v1  ;;  %1861 = vmatprep.mubr.msk.f32.mxu1 (%p523_p4), %vm549_vm0, %v701_v9  ;;  %v544_v11 = vld [vmem:[%s2589_s7 + $0x8] sm:$0xff] (%p523_p4)  ;;  %v537_v13 = vld [vmem:[%s2588_s6] sm:$0xff] (%p523_p4)  ;;  %v539_v22 = vld [vmem:[%s2588_s6 + $0x10] sm:$0xff] (%p523_p4) }
  0x13   : > { %1849 = vmatmul.mubr.msk.f32.vlgmr.msra.gmra.mxu0 %vm549_vm0, %v532_v3  ;;  %1873 = vmatprep.subr.mxu0 %v2119_v8  ;;  %v543_v15 = vld [vmem:[%s2589_s7] sm:$0xff]  ;;  %v545_v30 = vld [vmem:[%s2589_s7 + $0x10] sm:$0xff]  ;;  %v542_v41 = vld [vmem:[%s2588_s6 + $0x28] sm:$0xff] }
  0x14   : > { %1851 = vmatprep.mubr.msk.f32.mxu0 %vm549_vm0, %v533_v4  ;;  %v548_v43 = vld [vmem:[%s2589_s7 + $0x28] sm:$0xff]  ;;  %v547_v47 = vld [vmem:[%s2589_s7 + $0x20] sm:$0xff]  ;;  %v915_v1 = vld [vmem:[%s2592_s10 + $0x18] sm:$0xff] }
  0x15   : > { %v541_v49 = vld [vmem:[%s2588_s6 + $0x20] sm:$0xff]  ;;  %v702_v0 = vld [vmem:[%s2584_s2 + $0x8] sm:$0xff]  ;;  %v703_v2 = vld [vmem:[%s2584_s2 + $0x10] sm:$0xff] }
  0x16   : > { %v914_v3 = vld [vmem:[%s2592_s10 + $0x10] sm:$0xff]  ;;  %v704_v4 = vld [vmem:[%s2584_s2 + $0x18] sm:$0xff]  ;;  %v706_v9 = vld [vmem:[%s2584_s2 + $0x28] sm:$0xff] }
  0x17   : > { %1852 = vmatmul.mubr.msk.f32.gmra.mxu0 %vm549_vm0, %v534_v5  ;;  %v913_v5 = vld [vmem:[%s2592_s10 + $0x8] sm:$0xff] }
  0x18   : > { %1854 = vmatprep.mubr.msk.f32.mxu0 %vm549_vm0, %v535_v6  ;;  %v705_v6 = vld [vmem:[%s2584_s2 + $0x20] sm:$0xff] }
  0x1b   : > { %1855 = vmatmul.mubr.msk.f32.gmra.mxu0 %vm549_vm0, %v536_v7  ;;  %v912_v7 = vld [vmem:[%s2592_s10] sm:$0xff] }
  0x1c   : > { %1877 = vmatprep.mubr.msk.f32.mxu0 %vm2120_vm2, %v2119_v8 }
  0xd3   : > { %v1850_v12 = vpop.f32.mrf.mxu0 }
  0xd4   : > { %v640_v14 = vadd.f32 %v1850_v12, %v538_v10  ;;  %v707_v10 = vld [vmem:[%s2584_s2 + $0x30] sm:$0xff]  ;;  %v916_v12 = vld [vmem:[%s2593_s11] sm:$0xff] }
  0xd5   : > { %v634_v16 = vpop.f32.mrf.mxu0 }
  0xd6   : > { %v664_v18 = vadd.f32 %v640_v14, %v544_v11  ;;  %v635_v19 = vadd.f32 %v634_v16, %v537_v13  ;;  %v708_v11 = vld [vmem:[%s2584_s2 + $0x38] sm:$0xff]  ;;  %v917_v13 = vld [vmem:[%s2593_s11 + $0x8] sm:$0xff]  ;;  %v918_v14 = vld [vmem:[%s2593_s11 + $0x10] sm:$0xff] }
  0xd7   : > { %v1853_v21 = vpop.f32.mrf.mxu0  ;;  %v920_v16 = vld [vmem:[%s2593_s11 + $0x20] sm:$0xff] }
  0xd8   : > { %v1728_v23 = vmul.f32 -1.442695, %v664_v18  ;;  %v663_v24 = vadd.f32 %v635_v19, %v543_v15  ;;  %v650_v25 = vadd.f32 %v1853_v21, %v540_v17  ;;  %v919_v15 = vld [vmem:[%s2593_s11 + $0x18] sm:$0xff]  ;;  %v921_v17 = vld [vmem:[%s2593_s11 + $0x28] sm:$0xff]  ;;  %v922_v18 = vld [vmem:[%s2593_s11 + $0x30] sm:$0xff] }
  0xd9   : > { %v644_v26 = vpop.f32.mrf.mxu0  ;;  %v923_v19 = vld [vmem:[%s2593_s11 + $0x38] sm:$0xff]  ;;  %v925_v21 = vld [vmem:[%s2593_s11 + $0x48] sm:$0xff] }
  0xda   : > { %1999 = vpow2.f32 %v1728_v23  ;;  %v1727_v27 = vmul.f32 -1.442695, %v663_v24  ;;  %v678_v28 = vadd.f32 %v650_v25, %v546_v20  ;;  %v645_v29 = vadd.f32 %v644_v26, %v539_v22  ;;  %v924_v20 = vld [vmem:[%s2593_s11 + $0x40] sm:$0xff]  ;;  %v926_v23 = vld [vmem:[%s2593_s11 + $0x50] sm:$0xff]  ;;  %v927_v24 = vld [vmem:[%s2593_s11 + $0x58] sm:$0xff] }
  0xdb   : > { %v1856_v42 = vpop.f32.mrf.mxu0  ;;  %v838_v22 = vld [vmem:[%s2585_s3] sm:$0x1] }
  0xdc   : > { %2001 = vpow2.f32 %v1727_v27  ;;  %v1730_v31 = vmul.f32 -1.442695, %v678_v28  ;;  %v677_v32 = vadd.f32 %v645_v29, %v545_v30  ;;  %v660_v45 = vadd.f32 %v1856_v42, %v542_v41  ;;  %v1196_v41 = vld [vmem:[%s2601_s28 + $0x8] sm:$0xff] }
  0xdd   : > { %v654_v48 = vpop.f32.mrf.mxu0 }
  0xde   : > { %2003 = vpow2.f32 %v1730_v31  ;;  %v1729_v33 = vmul.f32 -1.442695, %v677_v32  ;;  %v655_v53 = vadd.f32 %v654_v48, %v541_v49  ;;  %v943_v49 = vld [vmem:[%s2595_s13 + $0x18] sm:$0xff] }
  0xe0   : > { %2005 = vpow2.f32 %v1729_v33 }
  0xe7   : > { %v2000_v34 = vpop.eup %1999 }
  0xe8   : > { %v672_v35 = vadd.f32 1.0, %v2000_v34 }
  0xe9   : > { %v2002_v36 = vpop.eup %2001 }
  0xea   : > { %2007 = vrcp.f32 %v672_v35  ;;  %v671_v37 = vadd.f32 1.0, %v2002_v36  ;;  %v929_v35 = vld [vmem:[%s2594_s12 + $0x8] sm:$0xff]  ;;  %v928_v36 = vld [vmem:[%s2594_s12] sm:$0xff] }
  0xeb   : > { %v2004_v38 = vpop.eup %2003 }
  0xec   : > { %2009 = vrcp.f32 %v671_v37  ;;  %v686_v39 = vadd.f32 1.0, %v2004_v38 }
  0xed   : > { %v2006_v40 = vpop.eup %2005 }
  0xee   : > { %2011 = vrcp.f32 %v686_v39  ;;  %v685_v44 = vadd.f32 1.0, %v2006_v40  ;;  %v941_v39 = vld [vmem:[%s2595_s13 + $0x8] sm:$0xff]  ;;  %v931_v40 = vld [vmem:[%s2594_s12 + $0x18] sm:$0xff] }
  0xf0   : > { %2013 = vrcp.f32 %v685_v44  ;;  %v940_v44 = vld [vmem:[%s2595_s13] sm:$0xff] }
  0xf7   : > { %v2008_v46 = vpop.eup %2007 }
  0xf8   : > { %v692_v50 = vmul.f32 %v2008_v46, %v548_v43  ;;  %v1197_v43 = vld [vmem:[%s2601_s28 + $0x10] sm:$0xff] }
  0xf9   : > { %v2010_v51 = vpop.eup %2009  ;;  %v930_v46 = vld [vmem:[%s2594_s12 + $0x10] sm:$0xff] }
  0xfa   : > { %v694_v52 = vadd.f32 %v692_v50, %v660_v45  ;;  %v691_v54 = vmul.f32 %v2010_v51, %v547_v47  ;;  %v1198_v50 = vld [vmem:[%s2601_s28 + $0x18] sm:$0xff] }
  0xfb   : > { %v2012_v56 = vpop.eup %2011 }
  0xfc   : > { %2015 = vtanh.f32 %v694_v52  ;;  %v693_v55 = vadd.f32 %v691_v54, %v655_v53  ;;  %v698_v57 = vsub.f32 1.0, %v2012_v56  ;;  %v942_v54 = vld [vmem:[%s2595_s13 + $0x10] sm:$0xff] }
  0xfd   : > { %v2014_v58 = vpop.eup %2013 }
  0xfe   : > { %2017 = vtanh.f32 %v693_v55  ;;  %v697_v61 = vsub.f32 1.0, %v2014_v58 }
 0x109   : > { %v2016_v59 = vpop.eup %2015 }
 0x10a   : > { %v700_v60 = vmul.f32 %v2016_v59, %v698_v57 }
 0x10b   : > { %v2018_v62 = vpop.eup %2017 }
 0x10c   : > { %1857 = vmatprep.subr.mxu1 %v700_v60  ;;  %1874 = vmatpush3.msra.mxu0 %v700_v60  ;;  %v699_v63 = vmul.f32 %v2018_v62, %v697_v61  ;;  %v933_v61 = vld [vmem:[%s2594_s12 + $0x28] sm:$0xff] }
 0x10d   : > { %1858 = vmatpush3.msra.mxu1 %v700_v60  ;;  %1875 = vmatprep.subr.mxu0 %v2119_v8  ;;  %v1195_v8 = vld [vmem:[%s2601_s28] sm:$0xff] }
 0x10e   : > { %1859 = vmatprep.subr.mxu1 %v699_v63  ;;  %1876 = vmatpush3.msra.mxu0 %v699_v63 }
 0x10f   : > { %1860 = vmatpush3.msra.mxu1 %v699_v63  ;;  %1878 = vmatmul.mubr.msk.f32.vlgmr.msra.gmra.mxu0 %vm549_vm0, %v838_v22 }
 0x110   : > { %1862 = vmatmul.mubr.msk.f32.vlgmr.msra.gmra.mxu1 %vm549_vm0, %v702_v0  ;;  %1880 = vmatprep.subr.mxu1 %v915_v1  ;;  %v932_v0 = vld [vmem:[%s2594_s12 + $0x20] sm:$0xff] }
 0x111   : > { %1864 = vmatprep.mubr.msk.f32.mxu1 %vm549_vm0, %v703_v2  ;;  %1881 = vmatpush3.msra.mxu1 %v915_v1  ;;  %v935_v2 = vld [vmem:[%s2594_s12 + $0x38] sm:$0xff] }
 0x112   : > { %1882 = vmatprep.subr.mxu1 %v914_v3  ;;  %1922 = vmatprep.mubr.msk.f32.mxu0 %vm1203_vm3, %v1195_v8 }
 0x113   : > { %1883 = vmatpush3.msra.mxu1 %v914_v3  ;;  %v945_v3 = vld [vmem:[%s2595_s13 + $0x28] sm:$0xff] }
 0x114   : > { %1865 = vmatmul.mubr.msk.f32.gmra.mxu1 %vm549_vm0, %v704_v4  ;;  %1884 = vmatprep.subr.mxu1 %v913_v5 }
 0x115   : > { %1867 = vmatprep.mubr.msk.f32.mxu1 %vm549_vm0, %v705_v6  ;;  %1885 = vmatpush3.msra.mxu1 %v913_v5  ;;  %v934_v6 = vld [vmem:[%s2594_s12 + $0x30] sm:$0xff] }
 0x116   : > { %1886 = vmatprep.subr.mxu1 %v912_v7 }
 0x117   : > { %1887 = vmatpush3.msra.mxu1 %v912_v7  ;;  %v944_v7 = vld [vmem:[%s2595_s13 + $0x20] sm:$0xff] }
 0x118   : > { %1868 = vmatmul.mubr.msk.f32.gmra.mxu1 %vm549_vm0, %v706_v9 }
 0x119   : > { %1870 = vmatprep.mubr.msk.f32.mxu1 %vm549_vm0, %v707_v10 }
 0x11c   : > { %1871 = vmatmul.mubr.msk.f32.gmra.mxu1 %vm549_vm0, %v708_v11  ;;  %v947_v11 = vld [vmem:[%s2595_s13 + $0x38] sm:$0xff] }
 0x11d   : > { %1888 = vmatprep.mubr.msk.f32.mxu1 %vm952_vm1, %v916_v12 }
 0x120   : > { %1889 = vmatmul.mubr.msk.f32.vlgmr.msra.gmra.mxu1 %vm952_vm1, %v917_v13 }
 0x121   : > { %1891 = vmatprep.mubr.msk.f32.mxu1 %vm952_vm1, %v918_v14  ;;  %v946_v14 = vld [vmem:[%s2595_s13 + $0x30] sm:$0xff] }
 0x124   : > { %1892 = vmatmul.mubr.msk.f32.gmra.mxu1 %vm952_vm1, %v919_v15 }
 0x125   : > { %1894 = vmatprep.mubr.msk.f32.mxu1 %vm952_vm1, %v920_v16 }
 0x128   : > { %1895 = vmatmul.mubr.msk.f32.gmra.mxu1 %vm952_vm1, %v921_v17 }
 0x129   : > { %1897 = vmatprep.mubr.msk.f32.mxu1 %vm952_vm1, %v922_v18 }
 0x12c   : > { %1898 = vmatmul.mubr.msk.f32.gmra.mxu1 %vm952_vm1, %v923_v19 }
 0x12d   : > { %1900 = vmatprep.mubr.msk.f32.mxu1 %vm952_vm1, %v924_v20 }
 0x130   : > { %1901 = vmatmul.mubr.msk.f32.gmra.mxu1 %vm952_vm1, %v925_v21 }
 0x131   : > { %1903 = vmatprep.mubr.msk.f32.mxu1 %vm952_vm1, %v926_v23 }
 0x134   : > { %1904 = vmatmul.mubr.msk.f32.gmra.mxu1 %vm952_vm1, %v927_v24 }
 0x1d0   : > { %v1863_v25 = vpop.f32.mrf.mxu1 }
 0x1d2   : > { %v799_v26 = vpop.f32.mrf.mxu1 }
 0x1d4   : > { %v1866_v27 = vpop.f32.mrf.mxu1 }
 0x1d6   : > { %v809_v28 = vpop.f32.mrf.mxu1 }
 0x1d8   : > { %v1869_v29 = vpop.f32.mrf.mxu1 }
 0x1da   : > { %v819_v30 = vpop.f32.mrf.mxu1 }
 0x1dc   : > { %v1872_v31 = vpop.f32.mrf.mxu1 }
 0x1dd   : > { %1906 = vmatprep.subr.mxu0 %v1872_v31 }
 0x1de   : > { %v829_v32 = vpop.f32.mrf.mxu1  ;;  %1907 = vmatpush3.msra.mxu0 %v1872_v31 }
 0x1df   : > { %1908 = vmatprep.subr.mxu0 %v829_v32 }
 0x1e0   : > { %1909 = vmatpush3.msra.mxu0 %v829_v32  ;;  %v1890_v33 = vpop.f32.mrf.mxu1 }
 0x1e1   : > { %1910 = vmatprep.subr.mxu0 %v1869_v29  ;;  %v1061_v38 = vadd.f32 %v1890_v33, %v929_v35  ;;  %v949_v33 = vld [vmem:[%s2595_s13 + $0x48] sm:$0xff] }
 0x1e2   : > { %1911 = vmatpush3.msra.mxu0 %v1869_v29  ;;  %v1055_v34 = vpop.f32.mrf.mxu1 }
 0x1e3   : > { %1912 = vmatprep.subr.mxu0 %v819_v30  ;;  %v1056_v42 = vadd.f32 %v1055_v34, %v928_v36  ;;  %v1115_v47 = vadd.f32 %v1061_v38, %v941_v39  ;;  %v948_v38 = vld [vmem:[%s2595_s13 + $0x40] sm:$0xff] }
 0x1e4   : > { %1913 = vmatpush3.msra.mxu0 %v819_v30  ;;  %v1893_v37 = vpop.f32.mrf.mxu1 }
 0x1e5   : > { %1914 = vmatprep.subr.mxu0 %v1866_v27  ;;  %v1071_v48 = vadd.f32 %v1893_v37, %v931_v40  ;;  %v1114_v51 = vadd.f32 %v1056_v42, %v940_v44  ;;  %v1753_v55 = vmul.f32 -1.442695, %v1115_v47  ;;  %v937_v37 = vld [vmem:[%s2594_s12 + $0x48] sm:$0xff]  ;;  %v936_v44 = vld [vmem:[%s2594_s12 + $0x40] sm:$0xff] }
 0x1e6   : > { %1915 = vmatpush3.msra.mxu0 %v1866_v27  ;;  %v1065_v45 = vpop.f32.mrf.mxu1 }
 0x1e7   : > { %1916 = vmatprep.subr.mxu0 %v809_v28  ;;  %v1066_v52 = vadd.f32 %v1065_v45, %v930_v46  ;;  %v1117_v56 = vadd.f32 %v1071_v48, %v943_v49  ;;  %v1752_v57 = vmul.f32 -1.442695, %v1114_v51  ;;  %2019 = vpow2.f32 %v1753_v55  ;;  %v951_v45 = vld [vmem:[%s2595_s13 + $0x58] sm:$0xff]  ;;  %v950_v51 = vld [vmem:[%s2595_s13 + $0x50] sm:$0xff] }
 0x1e8   : > { %1917 = vmatpush3.msra.mxu0 %v809_v28  ;;  %v1896_v53 = vpop.f32.mrf.mxu1 }
 0x1e9   : > { %1918 = vmatprep.subr.mxu0 %v1863_v25  ;;  %v1116_v58 = vadd.f32 %v1066_v52, %v942_v54  ;;  %v1755_v60 = vmul.f32 -1.442695, %v1117_v56  ;;  %2021 = vpow2.f32 %v1752_v57  ;;  %v1081_v1 = vadd.f32 %v1896_v53, %v933_v61  ;;  %v908_v54 = vpop.f32.mrf.mxu0  ;;  %v938_v57 = vld [vmem:[%s2594_s12 + $0x50] sm:$0xff] }
 0x1ea   : > { %1919 = vmatpush3.msra.mxu0 %v1863_v25  ;;  %v1075_v59 = vpop.f32.mrf.mxu1 }
 0x1eb   : > { %1920 = vmatprep.subr.mxu0 %v799_v26  ;;  %v1754_v62 = vmul.f32 -1.442695, %v1116_v58  ;;  %2023 = vpow2.f32 %v1755_v60  ;;  %v1076_v4 = vadd.f32 %v1075_v59, %v932_v0  ;;  %v1143_v10 = vadd.f32 %v1081_v1, %v945_v3  ;;  %v1879_v60 = vpop.f32.mrf.mxu0 }
 0x1ec   : > { %1921 = vmatpush3.msra.mxu0 %v799_v26  ;;  %v1899_v63 = vpop.f32.mrf.mxu1 }
 0x1ed   : > { %1923 = vmatmul.mubr.msk.f32.vlgmr.msra.gmra.mxu0 %vm1203_vm3, %v1196_v41  ;;  %2025 = vpow2.f32 %v1754_v62  ;;  %v1091_v9 = vadd.f32 %v1899_v63, %v935_v2  ;;  %v1142_v13 = vadd.f32 %v1076_v4, %v944_v7  ;;  %v1757_v16 = vmul.f32 -1.442695, %v1143_v10 }
 0x1ee   : > { %1925 = vmatprep.mubr.msk.f32.mxu0 %vm1203_vm3, %v1197_v43  ;;  %v1085_v5 = vpop.f32.mrf.mxu1 }
 0x1ef   : > { %v1086_v12 = vadd.f32 %v1085_v5, %v934_v6  ;;  %v1145_v15 = vadd.f32 %v1091_v9, %v947_v11  ;;  %v1756_v19 = vmul.f32 -1.442695, %v1142_v13  ;;  %2027 = vpow2.f32 %v1757_v16 }
 0x1f0   : > { %v1902_v43 = vpop.f32.mrf.mxu1 }
 0x1f1   : > { %1926 = vmatmul.mubr.msk.f32.gmra.mxu0 %vm1203_vm3, %v1198_v50  ;;  %v1144_v18 = vadd.f32 %v1086_v12, %v946_v14  ;;  %v1759_v21 = vmul.f32 -1.442695, %v1145_v15  ;;  %2029 = vpow2.f32 %v1756_v19  ;;  %v1101_v46 = vadd.f32 %v1902_v43, %v937_v37  ;;  %v939_v50 = vld [vmem:[%s2594_s12 + $0x58] sm:$0xff] }
 0x1f2   : > { %v1095_v49 = vpop.f32.mrf.mxu1  ;;  %v1199_v19 = vlaneseq }
 0x1f3   : > { %v1758_v24 = vmul.f32 -1.442695, %v1144_v18  ;;  %2031 = vpow2.f32 %v1759_v21  ;;  %v1096_v53 = vadd.f32 %v1095_v49, %v936_v44 }
 0x1f4   : > { %v2020_v17 = vpop.eup %2019  ;;  %v1905_v56 = vpop.f32.mrf.mxu1 }
 0x1f5   : > { %v1131_v22 = vadd.f32 1.0, %v2020_v17  ;;  %v1111_v59 = vadd.f32 %v1905_v56, %v939_v50 }
 0x1f6   : > { %v2022_v20 = vpop.eup %2021  ;;  %v1105_v62 = vpop.f32.mrf.mxu1 }
 0x1f7   : > { %v1130_v8 = vadd.f32 1.0, %v2022_v20  ;;  %2033 = vrcp.f32 %v1131_v22  ;;  %v1106_v0 = vadd.f32 %v1105_v62, %v938_v57  ;;  %v1200_v20 = vshrl.u32 %v1199_v19, 7 }
 0x1f8   : > { %v2024_v23 = vpop.eup %2023  ;;  %2035 = vpow2.f32 %v1758_v24 }
 0x1f9   : > { %v1133_v26 = vadd.f32 1.0, %v2024_v23  ;;  %2037 = vrcp.f32 %v1130_v8  ;;  %v1201_v21 = vsub.s32 0, %v1200_v20 }
 0x1fa   : > { %v2026_v25 = vpop.eup %2025 }
 0x1fb   : > { %v1132_v27 = vadd.f32 1.0, %v2026_v25  ;;  %2039 = vrcp.f32 %v1133_v26  ;;  %v1202_v22 = vrot.slane %v908_v54, %v1201_v21 }
 0x1fc   : > { %v2028_v28 = vpop.eup %2027 }
 0x1fd   : > { %2041 = vrcp.f32 %v1132_v27  ;;  %v1159_v31 = vadd.f32 1.0, %v2028_v28 }
 0x1fe   : > { %v2030_v29 = vpop.eup %2029 }
 0x1ff   : > { %v1158_v35 = vadd.f32 1.0, %v2030_v29  ;;  %2043 = vrcp.f32 %v1159_v31 }
 0x200   : > { %v2032_v30 = vpop.eup %2031 }
 0x201   : > { %v1161_v39 = vadd.f32 1.0, %v2032_v30  ;;  %2045 = vrcp.f32 %v1158_v35 }
 0x203   : > { %2047 = vrcp.f32 %v1161_v39 }
 0x204   : > { %v2034_v32 = vpop.eup %2033 }
 0x205   : > { %v2036_v34 = vpop.eup %2035  ;;  %v1171_v40 = vmul.f32 %v2034_v32, %v949_v33 }
 0x206   : > { %v2038_v36 = vpop.eup %2037  ;;  %v1160_v42 = vadd.f32 1.0, %v2036_v34 }
 0x207   : > { %v1170_v47 = vmul.f32 %v2038_v36, %v948_v38  ;;  %v1175_v52 = vadd.f32 %v1171_v40, %v1101_v46 }
 0x208   : > { %v2040_v41 = vpop.eup %2039  ;;  %2049 = vrcp.f32 %v1160_v42 }
 0x209   : > { %v1173_v55 = vmul.f32 %v2040_v41, %v951_v45  ;;  %2051 = vtanh.f32 %v1175_v52  ;;  %v1174_v58 = vadd.f32 %v1170_v47, %v1096_v53 }
 0x20a   : > { %v2042_v48 = vpop.eup %2041 }
 0x20b   : > { %v1172_v61 = vmul.f32 %v2042_v48, %v950_v51  ;;  %2053 = vtanh.f32 %v1174_v58  ;;  %v1177_v63 = vadd.f32 %v1173_v55, %v1111_v59 }
 0x20c   : > { %v2044_v2 = vpop.eup %2043 }
 0x20d   : > { %2055 = vtanh.f32 %v1177_v63  ;;  %v1176_v1 = vadd.f32 %v1172_v61, %v1106_v0  ;;  %v1183_v4 = vsub.f32 1.0, %v2044_v2 }
 0x20e   : > { %v2046_v3 = vpop.eup %2045 }
 0x20f   : > { %2057 = vtanh.f32 %v1176_v1  ;;  %v1182_v7 = vsub.f32 1.0, %v2046_v3 }
 0x210   : > { %v2048_v5 = vpop.eup %2047 }
 0x211   : > { %v1185_v10 = vsub.f32 1.0, %v2048_v5 }
 0x215   : > { %v2050_v6 = vpop.eup %2049 }
 0x216   : > { %v2052_v9 = vpop.eup %2051  ;;  %v1184_v13 = vsub.f32 1.0, %v2050_v6 }
 0x217   : > { %v1187_v11 = vmul.f32 %v2052_v9, %v1183_v4 }
 0x218   : > { %v2054_v12 = vpop.eup %2053 }
 0x219   : > { %v1186_v14 = vmul.f32 %v2054_v12, %v1182_v7  ;;  %1192 = vst.msk [vmem:[#allocation4 + $0x8] sm:$0xff] %vm1190_vm4, %v1187_v11 }
 0x21a   : > { %v2056_v15 = vpop.eup %2055 }
 0x21b   : > { %v1189_v16 = vmul.f32 %v2056_v15, %v1185_v10  ;;  %1191 = vst.msk [vmem:[#allocation4] sm:$0xff] %vm1190_vm4, %v1186_v14 }
 0x21c   : > { %v2058_v17 = vpop.eup %2057 }
 0x21d   : > { %v1188_v18 = vmul.f32 %v2058_v17, %v1184_v13  ;;  %1194 = vst.msk [vmem:[#allocation4 + $0x18] sm:$0xff] %vm1190_vm4, %v1189_v16 }
 0x21f   : > { %1193 = vst.msk [vmem:[#allocation4 + $0x10] sm:$0xff] %vm1190_vm4, %v1188_v18 }
 0x2ad   : > { %v1924_v23 = vpop.f32.mrf.mxu0 }
 0x2ae   : > { %v1288_v24 = vadd.f32 %v1924_v23, %v1202_v22 }
 0x2af   : > { %v1282_v8 = vpop.f32.mrf.mxu0 }
 0x2b0   : > { %1302 = vst.msk [vmem:[#allocation2 + $0x8] sm:$0xff] %vm1190_vm4, %v1288_v24  ;;  %v1283_v25 = vadd.f32 %v1282_v8, %v1202_v22 }
 0x2b1   : > { %v1927_v26 = vpop.f32.mrf.mxu0 }
 0x2b2   : > { %1301 = vst.msk [vmem:[#allocation2] sm:$0xff] %vm1190_vm4, %v1283_v25  ;;  %v1298_v27 = vadd.f32 %v1927_v26, %v1202_v22 }
 0x2b3   : > { %v1292_v28 = vpop.f32.mrf.mxu0 }
 0x2b4   : > { %1304 = vst.msk [vmem:[#allocation2 + $0x18] sm:$0xff] %vm1190_vm4, %v1298_v27  ;;  %v1293_v29 = vadd.f32 %v1292_v28, %v1202_v22 }
 0x2b6   : > { %1303 = vst.msk [vmem:[#allocation2 + $0x10] sm:$0xff] %vm1190_vm4, %v1293_v29 }
 0x2b7 PF: > { %v1306_v34 = vld [vmem:[#allocation2 + $0x8] sm:$0xff]  ;;  %vm1325_vm5 = vcmask 261120   ;;  %v2059_v36 = vld [vmem:[%s2583_s1] sm:$0xff]   ;;  %vm1383_vm6 = vcmask 7168   ;;  %p1768_p5 = scmp.ne.s32.totalorder %s2109_s21, 0 }
 0x2b8   : > { %1932 = vmatprep.mubr.msk.bf16.mxu0 %vm1325_vm5, %v2059_v36  ;;  %v2060_v37 = vld [vmem:[%s2583_s1 + $0x8] sm:$0xff]  }
 0x2b9   : > { %v1305_v32 = vld [vmem:[#allocation2] sm:$0xff] }
 0x2ba   : > { %v1309_v35 = vpack.c.bf16 %v1306_v34, %v1305_v32 }
 0x2bb   : > { %v1308_v31 = vld [vmem:[#allocation2 + $0x18] sm:$0xff] }
 0x2bd   : > { %v1307_v30 = vld [vmem:[#allocation2 + $0x10] sm:$0xff] }
 0x2be   : > { %v1310_v33 = vpack.c.bf16 %v1308_v31, %v1307_v30 }
 0x2c0   : > { %1928 = vmatprep.subr.bf16.mxu0 %v1310_v33 }
 0x2c1   : > { %1929 = vmatpush3.bf16.msra.mxu0 %v1310_v33 }
 0x2c2   : > { %1930 = vmatprep.subr.bf16.mxu0 %v1309_v35 }
 0x2c5   : > { %1931 = vmatpush3.bf16.msra.mxu0 %v1309_v35 }
 0x2c8   : > { %1933 = vmatmul.mubr.msk.bf16.vlgmr.msra.gmra.mxu0 %vm1325_vm5, %v2060_v37 }
 0x388   : > { %v1934_v38 = vpop.f32.mrf.mxu0 }
 0x389   : > { %1386 = vst.msk [vmem:[#allocation3 + $0x10] sm:$0xff] %vm1383_vm6, %v1934_v38 }
 0x38a   : > { %v1366_v39 = vpop.f32.mrf.mxu0 }
 0x38b   : > { %1384 = vst.msk [vmem:[#allocation3] sm:$0xff] %vm1383_vm6, %v1366_v39 }
 0x38c   : > { %v1935_v40 = vpop.f32.mrf.mxu0 }
 0x38d   : > { %1387 = vst.msk [vmem:[#allocation3 + $0x18] sm:$0xff] %vm1383_vm6, %v1935_v40 }
 0x38e   : > { %v1369_v41 = vpop.f32.mrf.mxu0 }
 0x38f   : > { %1385 = vst.msk [vmem:[#allocation3 + $0x8] sm:$0xff] %vm1383_vm6, %v1369_v41 }
 0x390   : > { %v1393_v44 = vld [vmem:[#allocation3 + $0x10] sm:$0xff] }
 0x391   : > { %v1398_v49 = vsel %vm1383_vm6, %v1393_v44, 0.0 }
 0x392   : > { %v1391_v42 = vld [vmem:[#allocation3] sm:$0xff] }
 0x393   : > { %v1395_v45 = vsel %vm1383_vm6, %v1391_v42, 0.0 }
 0x394   : > { %v1394_v47 = vld [vmem:[#allocation3 + $0x18] sm:$0xff] }
 0x395   : > { %v1400_v51 = vsel %vm1383_vm6, %v1394_v47, 0.0 }
 0x396   : > { %v1392_v43 = vld [vmem:[#allocation3 + $0x8] sm:$0xff] }
 0x397   : > { %v1396_v46 = vsel %vm1383_vm6, %v1392_v43, 0.0 }
 0x398   : > { %v1397_v48 = vadd.f32 %v1396_v46, %v1395_v45 }
 0x39a   : > { %v1399_v50 = vadd.f32 %v1398_v49, %v1397_v48 }
 0x39c   : > { %v1401_v52 = vadd.f32 %v1400_v51, %v1399_v50 }
 0x39e   : > { %1402 = vadd.xlane.f32.xlu0 %v1401_v52 }
 0x427   : > { %v1403_v53 = vpop.xlane.xlu0 %1402 }
 0x428   : > { %v1404_v54 = vrot.slane %v1403_v53, 4 }
 0x42a   : > { %v1405_v55 = vadd.f32 %v1404_v54, %v1403_v53 }
 0x42c   : > { %v1406_v56 = vrot.slane %v1405_v55, 2 }
 0x42e   : > { %v1407_v57 = vadd.f32 %v1406_v56, %v1405_v55 }
 0x430   : > { %v1408_v58 = vrot.slane %v1407_v57, 1 }
 0x432   : > { %v1409_v59 = vadd.f32 %v1408_v58, %v1407_v57 }
 0x434   : > { %1958 = vpush %v1409_v59 }
 0x465   : > { %s1959_s27 = spop %1958 }
 0x466   : > { %v1411_v60 = vstv %s1959_s27 }
 0x467   : > { %v1413_v61 = vmul.f32 0.03125, %v1411_v60 }
 0x469   : > { %v1414_v62 = vsub.f32 %v1391_v42, %v1413_v61  ;;  %v1415_v63 = vsub.f32 %v1392_v43, %v1413_v61  ;;  %v1416_v0 = vsub.f32 %v1393_v44, %v1413_v61  ;;  %v1417_v1 = vsub.f32 %v1394_v47, %v1413_v61 }
 0x46b   : > { %v1418_v2 = vmul.f32 %v1414_v62, %v1414_v62  ;;  %v1419_v3 = vmul.f32 %v1415_v63, %v1415_v63  ;;  %v1420_v4 = vmul.f32 %v1416_v0, %v1416_v0  ;;  %v1421_v5 = vmul.f32 %v1417_v1, %v1417_v1 }
 0x46d   : > { %v1422_v6 = vsel %vm1383_vm6, %v1418_v2, 0.0  ;;  %v1423_v7 = vsel %vm1383_vm6, %v1419_v3, 0.0  ;;  %v1425_v10 = vsel %vm1383_vm6, %v1420_v4, 0.0  ;;  %v1427_v12 = vsel %vm1383_vm6, %v1421_v5, 0.0 }
 0x46e   : > { %v1424_v9 = vadd.f32 %v1423_v7, %v1422_v6 }
 0x470   : > { %v1426_v11 = vadd.f32 %v1425_v10, %v1424_v9 }
 0x472   : > { %v1428_v13 = vadd.f32 %v1427_v12, %v1426_v11 }
 0x474   : > { %1429 = vadd.xlane.f32.xlu0 %v1428_v13 }
 0x4fd   : > { %v1430_v14 = vpop.xlane.xlu0 %1429 }
 0x4fe   : > { %v1431_v15 = vrot.slane %v1430_v14, 4 }
 0x500   : > { %v1432_v16 = vadd.f32 %v1431_v15, %v1430_v14 }
 0x502   : > { %v1433_v17 = vrot.slane %v1432_v16, 2 }
 0x504   : > { %v1434_v18 = vadd.f32 %v1433_v17, %v1432_v16 }
 0x506   : > { %v1435_v19 = vrot.slane %v1434_v18, 1 }
 0x508   : > { %v1436_v20 = vadd.f32 %v1435_v19, %v1434_v18 }
 0x50a   : > { %1960 = vpush %v1436_v20 }
 0x53b   : > { %s1961_s29 = spop %1960 }
 0x53c   : > { %v1438_v21 = vstv %s1961_s29 }
 0x53d   : > { %v1439_v22 = vmul.f32 0.03125, %v1438_v21 }
 0x53f   : > { %v1440_v23 = vadd.f32 1e-05, %v1439_v22 }
 0x541   : > { %2061 = vrsqrt.f32 %v1440_v23 }
 0x54b   : > { %1448 = sbr.rel (%p1768_p5) target bundleno = 1693 (0x69d), region = 96 }
 0x54e   : > { %v2062_v24 = vpop.eup %2061 }
 0x54f   : > { %v2514_v8 = vmul.f32 %v2062_v24, %v1414_v62  ;;  %v2516_v25 = vmul.f32 %v2062_v24, %v1415_v63  ;;  %v2518_v26 = vmul.f32 %v2062_v24, %v1416_v0  ;;  %v2520_v27 = vmul.f32 %v2062_v24, %v1417_v1 }
 0x550   : > { %v1498_v28 = vld [vmem:[#allocation4 + $0x18] sm:$0xff]  ;;  %v2121_v29 = vmov 0   ;;  %v1497_v30 = vld [vmem:[#allocation4 + $0x10] sm:$0xff]  ;;  %v1496_v31 = vld [vmem:[#allocation4 + $0x8] sm:$0xff] }
 0x551   : > { %2064 = vset.pattern.permute.xlu1 %v2121_v29  ;;  %2063 = vset.pattern.permute.xlu0 %v2121_v29  ;;  %v1495_v32 = vld [vmem:[#allocation4] sm:$0xff] }
 0x552   : > { %1457 = vperm.xlu1 %2064, %v2516_v25   ;;  %1452 = vperm.xlu0 %2063, %v2514_v8   ;;  %v1769_v33 = vld [vmem:[%s2590_s8] ss:$0 sm:$0xff] }
 0x553   : > { %1936 = vmatprep.subr.mxu0 %v1498_v28  ;;  %1950 = vmatprep.subr.mxu1 %v1498_v28  ;;  %v1770_v34 = vld [vmem:[%s2591_s9] ss:$0 sm:$0xff] }
 0x554   : > { %1937 = vmatpush3.msra.mxu0 %v1498_v28  ;;  %1954 = vmatpush3.msra.mxu1 %v1498_v28 }
 0x555   : > { %1938 = vmatprep.subr.mxu0 %v1497_v30  ;;  %1951 = vmatprep.subr.mxu1 %v1497_v30 }
 0x556   : > { %1467 = vperm.xlu1 %2064, %v2520_v27   ;;  %1462 = vperm.xlu0 %2063, %v2518_v26  }
 0x557   : > { %1939 = vmatpush3.msra.mxu0 %v1497_v30  ;;  %1955 = vmatpush3.msra.mxu1 %v1497_v30 }
 0x558   : > { %1940 = vmatprep.subr.mxu0 %v1496_v31  ;;  %1952 = vmatprep.subr.mxu1 %v1496_v31 }
 0x559   : > { %1941 = vmatpush3.msra.mxu0 %v1496_v31  ;;  %1956 = vmatpush3.msra.mxu1 %v1496_v31 }
 0x55a   : > { %1942 = vmatprep.subr.mxu0 %v1495_v32  ;;  %1953 = vmatprep.subr.mxu1 %v1495_v32 }
 0x55b   : > { %1943 = vmatpush3.msra.mxu0 %v1495_v32  ;;  %1957 = vmatpush3.msra.mxu1 %v1495_v32 }
 0x5cd   : > { %v1458_v35 = vpop.permute.xlu1 %1457  ;;  %v1453_v36 = vpop.permute.xlu0 %1452 }
 0x5ce   : > { %v1477_v37 = vmul.f32 %v1769_v33, %v1458_v35  ;;  %v1476_v38 = vmul.f32 %v1769_v33, %v1453_v36 }
 0x5d0   : > { %v1488_v39 = vadd.f32 %v1770_v34, %v1477_v37  ;;  %v1487_v40 = vadd.f32 %v1770_v34, %v1476_v38 }
 0x5d1   : > { %v1468_v41 = vpop.permute.xlu1 %1467  ;;  %v1463_v42 = vpop.permute.xlu0 %1462 }
 0x5d2   : > { %v1492_v43 = vmax.f32 %v1488_v39, 0.0  ;;  %v1479_v44 = vmul.f32 %v1769_v33, %v1468_v41  ;;  %v1478_v45 = vmul.f32 %v1769_v33, %v1463_v42  ;;  %v1491_v46 = vmax.f32 %v1487_v40, 0.0 }
 0x5d4   : > { %v1490_v47 = vadd.f32 %v1770_v34, %v1479_v44  ;;  %1944 = vmatprep.mubr.msk.f32.mxu0 %vm1325_vm5, %v1491_v46  ;;  %v1489_v48 = vadd.f32 %v1770_v34, %v1478_v45 }
 0x5d5   : > { %1945 = vmatmul.mubr.msk.f32.vlgmr.msra.gmra.mxu0 %vm1325_vm5, %v1492_v43 }
 0x5d6   : > { %v1494_v49 = vmax.f32 %v1490_v47, 0.0  ;;  %v1493_v50 = vmax.f32 %v1489_v48, 0.0 }
 0x5d8   : > { %1947 = vmatprep.mubr.msk.f32.mxu1 %vm1325_vm5, %v1493_v50 }
 0x5d9   : > { %1948 = vmatmul.mubr.msk.f32.vlgmr.msra.gmra.mxu1 %vm1325_vm5, %v1494_v49 }
 0x695   : > { %v1946_v51 = vpop.f32.mrf.mxu0 }
 0x696   : > { %1597 = vst.msk [vmem:[#allocation2 + $0x8] sm:$0xff] %vm1383_vm6, %v1946_v51 }
 0x697   : > { %v1577_v52 = vpop.f32.mrf.mxu0 }
 0x698   : > { %1596 = vst.msk [vmem:[#allocation2] sm:$0xff] %vm1383_vm6, %v1577_v52 }
 0x699   : > { %v1949_v53 = vpop.f32.mrf.mxu1 }
 0x69a   : > { %1599 = vst.msk [vmem:[#allocation2 + $0x18] sm:$0xff] %vm1383_vm6, %v1949_v53 }
 0x69b   : > { %v1587_v54 = vpop.f32.mrf.mxu1 }
 0x69c   : > { %1598 = vst.msk [vmem:[#allocation2 + $0x10] sm:$0xff] %vm1383_vm6, %v1587_v54 }
 0x69d PF: > { %p1775_p6 = scmp.ne.s32.totalorder %s2109_s21, 1 }
 0x69f   : > { %1603 = sbr.rel (%p1775_p6) target bundleno = 1837 (0x72d), region = 100 }
 0x6a4   : > { %v2122_v55 = vmov 0   ;;  %v1776_v56 = vld [vmem:[%s2596_s14] ss:$0 sm:$0xff] }
 0x6a5   : > { %2066 = vset.pattern.permute.xlu1 %v2122_v55  ;;  %2065 = vset.pattern.permute.xlu0 %v2122_v55  ;;  %v1777_v57 = vld [vmem:[%s2597_s15] ss:$0 sm:$0xff] }
 0x6a6   : > { %1617 = vperm.xlu1 %2066, %v2518_v26   ;;  %1607 = vperm.xlu0 %2065, %v2514_v8  }
 0x6aa   : > { %1622 = vperm.xlu1 %2066, %v2520_v27   ;;  %1612 = vperm.xlu0 %2065, %v2516_v25  }
 0x721   : > { %v1618_v58 = vpop.permute.xlu1 %1617  ;;  %v1608_v59 = vpop.permute.xlu0 %1607 }
 0x722   : > { %v1633_v60 = vmul.f32 %v1776_v56, %v1618_v58  ;;  %v1631_v61 = vmul.f32 %v1776_v56, %v1608_v59 }
 0x724   : > { %v1644_v62 = vadd.f32 %v1777_v57, %v1633_v60  ;;  %v1642_v63 = vadd.f32 %v1777_v57, %v1631_v61 }
 0x725   : > { %v1623_v0 = vpop.permute.xlu1 %1622  ;;  %v1613_v1 = vpop.permute.xlu0 %1612 }
 0x726   : > { %v1648_v2 = vmax.f32 %v1644_v62, 0.0  ;;  %v1646_v3 = vmax.f32 %v1642_v63, 0.0  ;;  %v1634_v4 = vmul.f32 %v1776_v56, %v1623_v0  ;;  %v1632_v5 = vmul.f32 %v1776_v56, %v1613_v1 }
 0x728   : > { %1652 = vst.msk [vmem:[#allocation5 + $0x10] sm:$0xff] %vm1325_vm5, %v1648_v2  ;;  %1650 = vst.msk [vmem:[#allocation5] sm:$0xff] %vm1325_vm5, %v1646_v3  ;;  %v1645_v6 = vadd.f32 %v1777_v57, %v1634_v4  ;;  %v1643_v7 = vadd.f32 %v1777_v57, %v1632_v5 }
 0x72a   : > { %v1649_v9 = vmax.f32 %v1645_v6, 0.0  ;;  %v1647_v10 = vmax.f32 %v1643_v7, 0.0 }
 0x72c   : > { %1653 = vst.msk [vmem:[#allocation5 + $0x18] sm:$0xff] %vm1325_vm5, %v1649_v9  ;;  %1651 = vst.msk [vmem:[#allocation5 + $0x8] sm:$0xff] %vm1325_vm5, %v1647_v10 }
 0x72d PF: > { %s2602_s21 = sadd.s32 4294967295, %s2117_s23   ;;  %s2123_s29 = smov [#allocation5]  }
 0x72e   : > { %p2558_p7 = scmp.eq.s32.totalorder %s2602_s21, 1  ;;  %s1660_s24 = sshll.u32 %s2123_s29, 4  ;;  %s1661_s24 = int_to_ptr.vmem [resolvable:$true] %s1660_s24 }
 0x72f   : > { %s2067_s30 = scalar_lea.vmem %s1661_s24, 512  ;;  %p2074_p11 = scmp.lt.s32.totalorder %s1661_s24, %s1661_s24 }
 0x730   : > { %p2068_p8 = scmp.ne.s32.totalorder %s1661_s24, %s2067_s30  ;;  %p2075_p12 = scmp.lt.s32.totalorder %s2067_s30, %s2067_s30 }
 0x732   : > { %p2069_p9 = pnand %p2068_p8, %p2558_p7  ;;  %p2076_p13 = por %p2075_p12, %p2074_p11 }
 0x734   : > { %p2070_p10 = pneg %p2069_p9 }
 0x736   : > { %p2077_p0 = pnand %p2076_p13, %p2070_p10 }
 0x738   : > { %2080 = shalt.err (!%p2077_p0)
}
 0x739   : > { %s2124_s0 = smov 128   ;;  %s2125_s17 = smov 8  }
 0x73a   : > { %1963 = dma.vmem_to_hbm [thread:$0]  (%p2558_p7), %s1661_s24, 512, %s2598_s16, [#allocation6], %s2124_s0, %s2124_s0, %s2125_s17  }
 0x73b   : > { %2104 = dma.done.wait (%p2558_p7), [#allocation6], 512  }
 0x73c   : > { %2106 = vsyncadd (%p2558_p7), [#allocation6], 4294966784 }
 0x73d PF: > { %s27_s23 = sadd.s32 1, %s2117_s23   ;;  %s2604_s21 = smov %s2113_s22 }
 0x73e   : > { %p24_p1 = scmp.ge.s32.totalorder %s27_s23, 4   ;;  %s2605_s22 = smov %s2607_s25 }
 0x740   :  { %26 = sbr.rel (!%p24_p1) target bundleno = 4 (0x4), region = 128 }
 0x745   :  { %1676 = vsyncpa [#allocation6], 1 }
 0x746   :  { %1678 = vsyncpa [#allocation6 + $0x1], 1 }

</bundles_post_ra>
